<compile_context>
chip_gen: v6e
topology: v6e:2x2x1
jax: 0.10.0
libtpu: 0.0.40
codegen_flags: <defaults>
</compile_context>

<pallas_src>
import jax
import jax.numpy as jnp
from jax.experimental import pallas as pl
from jax.experimental.pallas import tpu as pltpu  # noqa: F401


def _tre_objective_kernel(counts_ref, emb_ref, onehot_ref, loss_ref):
    """Single-invocation kernel: additive composition + summed cross-entropy.

    counts_ref : (C, 1, V) f32 -- leaf multiplicity per concept (broadcast over V)
    emb_ref    : (C, L, V) f32 -- embedding table in per-position-logit layout
    onehot_ref : (L, V)    f32 -- one-hot target message tokens
    loss_ref   : (1, 1)    f32 -- scalar loss
    """
    # AdditiveComposition over the derivation tree == counts-weighted sum of
    # concept embeddings: one elementwise pass + leading-axis vreg reduction.
    composed = jnp.sum(counts_ref[...] * emb_ref[...], axis=0)          # (L, V)

    # MultipleCrossEntropyLoss:
    #   sum_l [ logsumexp_v(composed[l, :]) - composed[l, msg_l] ]
    m = jnp.max(composed, axis=-1, keepdims=True)
    lse = jnp.log(jnp.sum(jnp.exp(composed - m), axis=-1, keepdims=True)) + m
    tgt = jnp.sum(composed * onehot_ref[...], axis=-1, keepdims=True)   # (L, 1)
    loss_ref[...] = jnp.sum(lse - tgt).reshape(1, 1)


def tre_objective(emb_weight, messages, leaf_concepts, *, message_length, vocab_size):
    """emb_weight   : (num_concepts, message_length*vocab_size) f32
       messages     : (message_length,) int32 token ids in [0, vocab_size)
       leaf_concepts: (n_leaves,) int32 leaf concept ids of the derivation tree
    """
    num_concepts = emb_weight.shape[0]
    C, L, V = num_concepts, message_length, vocab_size

    # --- plain-JAX glue (reshapes / counts / one-hot); compose+loss are in-kernel ---
    emb3 = emb_weight.reshape(C, L, V).astype(jnp.float32)
    counts = jnp.zeros((C,), jnp.float32).at[leaf_concepts].add(1.0)     # bincount
    counts3 = jnp.broadcast_to(counts[:, None, None], (C, 1, V))
    # NOTE: out-of-range token ids silently contribute a zero target logit
    # (PyTorch CE would raise); behavior matches the previous kernel.
    onehot = jax.nn.one_hot(messages, V, dtype=jnp.float32)              # (L, V)

    cost = pl.CostEstimate(
        flops=2 * C * L * V + 6 * L * V,
        transcendentals=L * V + L,
        bytes_accessed=4 * (C * L * V + C * V + L * V + 1),
    )

    loss = pl.pallas_call(
        _tre_objective_kernel,
        out_shape=jax.ShapeDtypeStruct((1, 1), jnp.float32),
        cost_estimate=cost,
    )(counts3, emb3, onehot)
    return loss[0, 0]


def flatten_derivation(d):
    """Flatten an arbitrary derivation tuple-tree to its leaf concept ids
    (valid because additive composition is associative/commutative)."""
    if isinstance(d, tuple):
        out = []
        for node in d:
            out.extend(flatten_derivation(node))
        return out
    return [int(d)]


if __name__ == "__main__":
    num_concepts, vocab_size, message_length = 10, 32, 8

    key = jax.random.PRNGKey(0)
    k_emb, k_msg = jax.random.split(key)

    # Deterministic parameter init (PyTorch Embedding default ~ N(0,1)); zero_init=False.
    emb_weight = jax.random.normal(
        k_emb, (num_concepts, message_length * vocab_size), jnp.float32)

    # Derivation tree of concept ids (repeated leaf exercises the counts path):
    # compose = emb[3] + emb[7] + emb[1] + emb[3]
    derivations = ((3, 7), (1, 3))
    leaf_concepts = jnp.array(flatten_derivation(derivations), jnp.int32)

    # Target message: one token id per position.
    messages = jax.random.randint(
        k_msg, (message_length,), 0, vocab_size, dtype=jnp.int32)

    loss = tre_objective(emb_weight, messages, leaf_concepts,
                         message_length=message_length, vocab_size=vocab_size)
    loss = jax.block_until_ready(loss)

    # Pure-JAX reference of the same semantics.
    composed = emb_weight[leaf_concepts].sum(0).reshape(message_length, vocab_size)
    lse = jax.scipy.special.logsumexp(composed, axis=-1)
    ref = jnp.sum(lse - composed[jnp.arange(message_length), messages])
    assert jnp.allclose(loss, ref, rtol=1e-5, atol=1e-5), (float(loss), float(ref))

    print("KERNEL_OK")
</pallas_src>

<mosaic_0001>
module attributes {stable_mosaic.version = 11 : i64} {
  func.func @_tre_objective_kernel(%arg0: memref<10x1x32xf32, #tpu.memory_space<vmem>>, %arg1: memref<10x8x32xf32, #tpu.memory_space<vmem>>, %arg2: memref<8x32xf32, #tpu.memory_space<vmem>>, %arg3: memref<1x1xf32, #tpu.memory_space<vmem>>) attributes {dimension_semantics = [], scalar_prefetch = 0 : i64, scratch_operands = 0 : i64, tpu.core_type = #tpu.core_type<tc>} {
    %c0 = arith.constant 0 : index
    %c0_0 = arith.constant 0 : index
    %c0_1 = arith.constant 0 : index
    %0 = vector.load %arg0[%c0, %c0_0, %c0_1] : memref<10x1x32xf32, #tpu.memory_space<vmem>>, vector<10x1x32xf32>
    %c0_2 = arith.constant 0 : index
    %c0_3 = arith.constant 0 : index
    %c0_4 = arith.constant 0 : index
    %1 = vector.load %arg1[%c0_2, %c0_3, %c0_4] : memref<10x8x32xf32, #tpu.memory_space<vmem>>, vector<10x8x32xf32>
    %2 = vector.broadcast %0 : vector<10x1x32xf32> to vector<10x8x32xf32>
    %3 = arith.mulf %2, %1 : vector<10x8x32xf32>
    %cst = arith.constant dense<0.000000e+00> : vector<8x32xf32>
    %4 = vector.multi_reduction <add>, %3, %cst [0] : vector<10x8x32xf32> to vector<8x32xf32>
    %cst_5 = arith.constant dense<0xFF800000> : vector<8xf32>
    %5 = vector.multi_reduction <maximumf>, %4, %cst_5 [1] : vector<8x32xf32> to vector<8xf32>
    %6 = vector.shape_cast %5 : vector<8xf32> to vector<8x1xf32>
    %7 = vector.broadcast %6 : vector<8x1xf32> to vector<8x32xf32>
    %8 = arith.subf %4, %7 : vector<8x32xf32>
    %9 = math.exp %8 : vector<8x32xf32>
    %cst_6 = arith.constant dense<0.000000e+00> : vector<8xf32>
    %10 = vector.multi_reduction <add>, %9, %cst_6 [1] : vector<8x32xf32> to vector<8xf32>
    %11 = vector.shape_cast %10 : vector<8xf32> to vector<8x1xf32>
    %12 = math.log %11 : vector<8x1xf32>
    %13 = arith.addf %12, %6 : vector<8x1xf32>
    %c0_7 = arith.constant 0 : index
    %c0_8 = arith.constant 0 : index
    %14 = vector.load %arg2[%c0_7, %c0_8] : memref<8x32xf32, #tpu.memory_space<vmem>>, vector<8x32xf32>
    %15 = arith.mulf %4, %14 : vector<8x32xf32>
    %cst_9 = arith.constant dense<0.000000e+00> : vector<8xf32>
    %16 = vector.multi_reduction <add>, %15, %cst_9 [1] : vector<8x32xf32> to vector<8xf32>
    %17 = vector.shape_cast %16 : vector<8xf32> to vector<8x1xf32>
    %18 = arith.subf %13, %17 : vector<8x1xf32>
    %19 = vector.shape_cast %18 : vector<8x1xf32> to vector<1x8x1xf32>
    %cst_10 = arith.constant dense<0.000000e+00> : vector<1xf32>
    %20 = vector.multi_reduction <add>, %19, %cst_10 [1, 2] : vector<1x8x1xf32> to vector<1xf32>
    %21 = vector.shape_cast %20 : vector<1xf32> to vector<1x1x1xf32>
    %22 = vector.extract %21[0, 0, 0] : f32 from vector<1x1x1xf32>
    %23 = vector.broadcast %22 : f32 to vector<1x1xf32>
    %c0_11 = arith.constant 0 : index
    %c0_12 = arith.constant 0 : index
    %24 = vector.load %arg3[%c0_11, %c0_12] : memref<1x1xf32, #tpu.memory_space<vmem>>, vector<1x1xf32>
    tpu.vector_store %arg3[%c0_11, %c0_12], %23 {strides = array<i32>} : memref<1x1xf32, #tpu.memory_space<vmem>>, vector<1x1xf32>,
    return
  }
}

</mosaic_0001>

<bundles_post_ra>
// kernel: tpu_custom_call.1
= control target key start
LH: loop header
LB: loop body
LE: loop exit
PB: predicated region body
PF: predicated region fallthrough
CT: control target
= control target key end

     0   :  { %8 = vsyncpa [#allocation3], 0  ;;  %s375_s0 = inlined_call_operand.hbm [shape: f32[10,1,32], index: 0, kind: input, shape index: {}]   ;;  %s376_s1 = inlined_call_operand.hbm [shape: f32[10,8,32], index: 1, kind: input, shape index: {}]   ;;  %s377_s2 = inlined_call_operand.hbm [shape: f32[8,32], index: 2, kind: input, shape index: {}]   ;;  %s378_s3 = inlined_call_operand.hbm [shape: f32[1,1], index: 3, kind: output, shape index: {}]  }
   0x1   :  { %9 = vsyncpa [#allocation6], 0 }
   0x2   :  { %10 = vsyncpa [#allocation4], 0  ;;  %s322_s12 = smov [#allocation5]  }
   0x3   :  { %s28_s13 = sshll.u32 %s322_s12, 4  ;;  %s29_s13 = int_to_ptr.vmem [resolvable:$true] %s28_s13 }
   0x4   :  { %s244_s14 = scalar_lea.vmem %s29_s13, 1280  ;;  %p249_p1 = scmp.lt.s32.totalorder %s29_s13, %s29_s13 }
   0x5   :  { %p245_p0 = scmp.ne.s32.totalorder %s29_s13, %s244_s14  ;;  %p250_p2 = scmp.lt.s32.totalorder %s244_s14, %s244_s14 }
   0x7   :  { %p251_p3 = por %p250_p2, %p249_p1 }
   0x9   :  { %p252_p4 = pnand %p251_p3, %p245_p0 }
   0xb   :  { %255 = shalt.err (!%p252_p4)
}
   0xc   :  { %s323_s15 = smov 128   ;;  %s324_s16 = smov 8  }
   0xd   :  { %34 = dma.hbm_to_vmem [thread:$0]  %s376_s1, 1280, %s29_s13, [#allocation6], %s323_s15, %s323_s15, %s324_s16  }
   0xe   :  { %s325_s19 = smov [#allocation2]  }
   0xf   :  { %s16_s20 = sshll.u32 %s325_s19, 4  ;;  %s17_s20 = int_to_ptr.vmem [resolvable:$true] %s16_s20 }
  0x10   :  { %s264_s21 = scalar_lea.vmem %s17_s20, 160  ;;  %p269_p6 = scmp.lt.s32.totalorder %s17_s20, %s17_s20 }
  0x11   :  { %p265_p5 = scmp.ne.s32.totalorder %s17_s20, %s264_s21  ;;  %p270_p7 = scmp.lt.s32.totalorder %s264_s21, %s264_s21 }
  0x13   :  { %p271_p8 = por %p270_p7, %p269_p6 }
  0x15   :  { %p272_p9 = pnand %p271_p8, %p265_p5 }
  0x17   :  { %275 = shalt.err (!%p272_p9)
}
  0x18   :  { %s326_s22 = smov 16   ;;  %s327_s23 = smov 1  }
  0x19   :  { %22 = dma.hbm_to_vmem [thread:$0]  %s375_s0, 160, %s17_s20, [#allocation3], %s326_s22, %s326_s22, %s327_s23  }
  0x1a   :  { %s328_s26 = smov [#allocation7]  }
  0x1b   :  { %s41_s27 = sshll.u32 %s328_s26, 4  ;;  %s42_s27 = int_to_ptr.vmem [resolvable:$true] %s41_s27 }
  0x1c   :  { %s284_s1 = scalar_lea.vmem %s42_s27, 128  ;;  %p289_p11 = scmp.lt.s32.totalorder %s42_s27, %s42_s27 }
  0x1d   :  { %p285_p10 = scmp.ne.s32.totalorder %s42_s27, %s284_s1  ;;  %p290_p12 = scmp.lt.s32.totalorder %s284_s1, %s284_s1 }
  0x1f   :  { %p291_p13 = por %p290_p12, %p289_p11 }
  0x21   :  { %p292_p0 = pnand %p291_p13, %p285_p10 }
  0x23   :  { %295 = shalt.err (!%p292_p0)
}
  0x24   :  { %44 = dma.hbm_to_vmem [thread:$0]  %s377_s2, 128, %s42_s27, [#allocation6]  }
  0x25   :  { %316 = dma.done.wait [#allocation3], 160  }
  0x26   :  { %317 = vsyncadd [#allocation3], 4294967136 }
  0x27   :  { %318 = dma.done.wait [#allocation6], 1408  }
  0x28   :  { %319 = vsyncadd [#allocation6], 4294965888  ;;  %v212_v0 = vld [vmem:[#allocation2] ss:$0 sm:$0xff]  ;;  %v213_v1 = vld [vmem:[#allocation2 + $0x1] ss:$0 sm:$0xff] }
  0x29   :  { %v214_v2 = vld [vmem:[#allocation2 + $0x2] ss:$0 sm:$0xff]  ;;  %v215_v3 = vld [vmem:[#allocation2 + $0x3] ss:$0 sm:$0xff]  ;;  %v216_v4 = vld [vmem:[#allocation2 + $0x4] ss:$0 sm:$0xff] }
  0x2a   :  { %v64_v5 = vld [vmem:[#allocation5] sm:$0xff]  ;;  %v65_v6 = vld [vmem:[#allocation5 + $0x8] sm:$0xff]  ;;  %vm144_vm0 = vcmask 261120   ;;  %v66_v7 = vld [vmem:[#allocation5 + $0x10] sm:$0xff]  ;;  %vm182_vm1 = vcmask 7168   ;;  %s329_s0 = smov [#allocation8]  }
  0x2b   :  { %v67_v8 = vld [vmem:[#allocation5 + $0x18] sm:$0xff]  ;;  %v68_v9 = vld [vmem:[#allocation5 + $0x20] sm:$0xff]  ;;  %v134_v10 = vmul.f32 %v212_v0, %v64_v5  ;;  %v135_v11 = vmul.f32 %v213_v1, %v65_v6  ;;  %v136_v12 = vmul.f32 %v214_v2, %v66_v7  ;;  %v69_v15 = vld [vmem:[#allocation5 + $0x28] sm:$0xff]  ;;  %s202_s2 = sshll.u32 %s329_s0, 4  ;;  %vm194_vm2 = vcmask 0   ;;  %s203_s2 = int_to_ptr.vmem [resolvable:$true] %s202_s2 }
  0x2c   :  { %v137_v13 = vmul.f32 %v215_v3, %v67_v8  ;;  %v217_v14 = vld [vmem:[#allocation2 + $0x5] ss:$0 sm:$0xff]  ;;  %v138_v17 = vmul.f32 %v216_v4, %v68_v9  ;;  %v218_v20 = vld [vmem:[#allocation2 + $0x6] ss:$0 sm:$0xff]  ;;  %v70_v21 = vld [vmem:[#allocation5 + $0x30] sm:$0xff]  ;;  %s296_s4 = scalar_lea.vmem %s203_s2, 16  ;;  %p301_p2 = scmp.lt.s32.totalorder %s203_s2, %s203_s2 }
  0x2d   :  { %v145_v16 = vsel %vm144_vm0, %v134_v10, 0.0  ;;  %v146_v18 = vsel %vm144_vm0, %v135_v11, 0.0  ;;  %v148_v19 = vsel %vm144_vm0, %v136_v12, 0.0  ;;  %v139_v23 = vmul.f32 %v217_v14, %v69_v15  ;;  %v219_v25 = vld [vmem:[#allocation2 + $0x7] ss:$0 sm:$0xff]  ;;  %v72_v31 = vld [vmem:[#allocation5 + $0x40] sm:$0xff]  ;;  %p297_p1 = scmp.ne.s32.totalorder %s203_s2, %s296_s4 }
  0x2e   :  { %v147_v22 = vadd.f32 %v146_v18, %v145_v16  ;;  %v150_v24 = vsel %vm144_vm0, %v137_v13, 0.0  ;;  %v71_v26 = vld [vmem:[#allocation5 + $0x38] sm:$0xff]  ;;  %v140_v28 = vmul.f32 %v218_v20, %v70_v21  ;;  %v152_v29 = vsel %vm144_vm0, %v138_v17, 0.0  ;;  %v73_v36 = vld [vmem:[#allocation5 + $0x48] sm:$0xff]  ;;  %v176_v50 = vld [vmem:[#allocation7] sm:$0xff]  ;;  %s300_s5 = scalar_lea.vmem %s203_s2, 32 }
  0x2f   :  { %v220_v30 = vld [vmem:[#allocation2 + $0x8] ss:$0 sm:$0xff]  ;;  %v141_v33 = vmul.f32 %v219_v25, %v71_v26  ;;  %v154_v34 = vsel %vm144_vm0, %v139_v23, 0.0  ;;  %v221_v35 = vld [vmem:[#allocation2 + $0x9] ss:$0 sm:$0xff]  ;;  %p302_p3 = scmp.lt.s32.totalorder %s300_s5, %s296_s4 }
  0x30   :  { %v149_v27 = vadd.f32 %v148_v19, %v147_v22  ;;  %v142_v38 = vmul.f32 %v220_v30, %v72_v31  ;;  %v156_v39 = vsel %vm144_vm0, %v140_v28, 0.0  ;;  %v143_v41 = vmul.f32 %v221_v35, %v73_v36 }
  0x31   :  { %v158_v42 = vsel %vm144_vm0, %v141_v33, 0.0  ;;  %p303_p4 = por %p302_p3, %p301_p2 }
  0x32   :  { %v151_v32 = vadd.f32 %v150_v24, %v149_v27  ;;  %v160_v44 = vsel %vm144_vm0, %v142_v38, 0.0  ;;  %v162_v46 = vsel %vm144_vm0, %v143_v41, 0.0 }
  0x33   :  { %p304_p5 = pnand %p303_p4, %p297_p1 }
  0x34   :  { %v153_v37 = vadd.f32 %v152_v29, %v151_v32 }
  0x36   :  { %v155_v40 = vadd.f32 %v154_v34, %v153_v37 }
  0x38   :  { %v157_v43 = vadd.f32 %v156_v39, %v155_v40 }
  0x3a   :  { %v159_v45 = vadd.f32 %v158_v42, %v157_v43 }
  0x3c   :  { %v161_v47 = vadd.f32 %v160_v44, %v159_v45 }
  0x3e   :  { %v163_v48 = vadd.f32 %v162_v46, %v161_v47 }
  0x40   :  { %v164_v49 = vsel %vm144_vm0, %v163_v48, -inf  ;;  %v177_v51 = vmul.f32 %v176_v50, %v163_v48 }
  0x41   :  { %165 = vmax.xlane.f32.xlu0 %v164_v49 }
  0x42   :  { %v178_v52 = vsel %vm144_vm0, %v177_v51, 0.0 }
  0x43   :  { %179 = vadd.xlane.f32.xlu1 %v178_v52 }
  0xca   :  { %v166_v53 = vpop.xlane.xlu0 %165 }
  0xcb   :  { %v167_v54 = vsub.f32 %v163_v48, %v166_v53 }
  0xcc   :  { %v180_v61 = vpop.xlane.xlu1 %179 }
  0xcd   :  { %v168_v55 = vmul.f32 1.442695, %v167_v54 }
  0xcf   :  { %232 = vpow2.f32 %v168_v55 }
  0xdc   :  { %v233_v56 = vpop.eup %232 }
  0xdd   :  { %v170_v57 = vsel %vm144_vm0, %v233_v56, 0.0 }
  0xde   :  { %171 = vadd.xlane.f32.xlu0 %v170_v57 }
 0x167   :  { %v172_v58 = vpop.xlane.xlu0 %171 }
 0x168   :  { %234 = vlog2.f32 %v172_v58 }
 0x175   :  { %v235_v59 = vpop.eup %234 }
 0x176   :  { %v174_v60 = vmul.f32 0.6931472, %v235_v59 }
 0x178   :  { %v175_v62 = vadd.f32 %v174_v60, %v166_v53 }
 0x17a   :  { %v181_v63 = vsub.f32 %v175_v62, %v180_v61 }
 0x17c   :  { %v183_v0 = vsel %vm182_vm1, %v181_v63, 0.0 }
 0x17d   :  { %184 = vadd.xlane.f32.xlu1 %v183_v0 }
 0x206   :  { %v185_v1 = vpop.xlane.xlu1 %184 }
 0x207   :  { %v186_v2 = vrot.slane %v185_v1, 4 }
 0x209   :  { %v187_v3 = vadd.f32 %v186_v2, %v185_v1 }
 0x20b   :  { %v188_v4 = vrot.slane %v187_v3, 2 }
 0x20d   :  { %v189_v5 = vadd.f32 %v188_v4, %v187_v3 }
 0x20f   :  { %v190_v6 = vrot.slane %v189_v5, 1 }
 0x211   :  { %v191_v7 = vadd.f32 %v190_v6, %v189_v5 }
 0x213   :  { %222 = vpush %v191_v7 }
 0x244   :  { %s223_s30 = spop %222 }
 0x245   :  { %v193_v8 = vstv %s223_s30 }
 0x246   :  { %195 = vst.msk [vmem:[#allocation8] sm:$0x1] %vm194_vm2, %v193_v8 }
 0x247   :  { %307 = shalt.err (!%p304_p5)
}
 0x248   :  { %205 = dma.vmem_to_hbm [thread:$0]  %s203_s2, 16, %s378_s3, [#allocation4]  }
 0x249   :  { %320 = dma.done.wait [#allocation4], 16  }
 0x24a   :  { %321 = vsyncadd [#allocation4], 4294967280 }
 0x24b   :  { %209 = vsyncpa [#allocation3], 1 }
 0x24c   :  { %210 = vsyncpa [#allocation6], 1 }
 0x24d   :  { %211 = vsyncpa [#allocation4], 1 }

</bundles_post_ra>
